<compile_context>
chip_gen: v7x
topology: tpu7x:2x2x1
jax: 0.10.0
libtpu: 0.0.40
codegen_flags: <defaults>
</compile_context>

<pallas_src>
import functools

import jax
import jax.numpy as jnp
from jax.experimental import pallas as pl
from jax.experimental.pallas import tpu as pltpu


def _act(x, activation):
    if activation == "ReLU":
        return jnp.maximum(x, 0.0)
    elif activation == "GELU":
        # torch nn.GELU() default is the exact (erf) form.
        return jax.nn.gelu(x, approximate=False)
    raise ValueError(f"unknown activation: {activation}")


def adafusor_kernel(lat_ref, w1x_ref, w1mv_ref, b1_ref, w2_ref, b2_ref,
                    w3_ref, b3_ref, out_ref, *, activation):
    n = lat_ref.shape[0]
    w_dtype = w1x_ref.dtype

    # Per-n [C, TILE_L] slabs (lane-dense over TILE_L). N is small & static, so
    # the batch axis is unrolled; every matmul below is a plain 2-D MXU op.
    # TODO(synk): for very large N, switch the unroll to an in-kernel loop or a
    # second grid axis to bound code size.
    lat = [lat_ref[i] for i in range(n)]                       # input dtype
    lat32 = [x.astype(jnp.float32) for x in lat]               # stats in f32

    # torch.mean(latent, dim=0) / torch.var(latent, dim=0) (unbiased, /(N-1)).
    mean = functools.reduce(jnp.add, lat32) * (1.0 / n)                  # [C, TL]
    inv_nm1 = (1.0 / (n - 1)) if n > 1 else float("nan")  # torch: NaN at N==1
    var = functools.reduce(
        jnp.add, [(x - mean) * (x - mean) for x in lat32]) * inv_nm1     # [C, TL]

    # input_fc on cat([latent, mean, var]): the mean/var part is shared by all
    # n -> fused single matmul with K = 2C; the per-n part is W1x @ lat[n].
    mv = jnp.concatenate([mean, var], axis=0).astype(w_dtype)            # [2C, TL]
    shared = (jnp.dot(w1mv_ref[...], mv, preferred_element_type=jnp.float32)
              + b1_ref[...])                                             # [C, TL]
    gf = [_act(jnp.dot(w1x_ref[...], x, preferred_element_type=jnp.float32)
               + shared, activation)
          for x in lat]                                                  # N x [C, TL]

    # weight_fc: Linear(C -> 1) + act as VPU multiply + sublane reduce (XLU),
    # then softmax over the batch axis; everything stays lane-dense over TL.
    w2 = w2_ref[...].astype(jnp.float32)                                 # [C, 1]
    b2 = b2_ref[0]                                                       # SMEM scalar
    logits = [_act(jnp.sum(g * w2, axis=0, keepdims=True) + b2, activation)
              for g in gf]                                               # N x [1, TL]
    m = functools.reduce(jnp.maximum, logits)
    es = [jnp.exp(lg - m) for lg in logits]
    denom = functools.reduce(jnp.add, es)
    weighted = functools.reduce(
        jnp.add, [g * (e / denom) for g, e in zip(gf, es)])              # [C, TL]

    # output_fc: Linear(C -> C) + act; channels-first store is lane-dense.
    out = _act(jnp.dot(w3_ref[...], weighted.astype(w_dtype),
                       preferred_element_type=jnp.float32)
               + b3_ref[...], activation)                                # [C, TL]
    out_ref[...] = out.astype(out_ref.dtype)


def _pick_tile_l(L, N, C, itemsize, *, budget_bytes=24 << 20, cap=None):
    """Largest multiple-of-128 L-tile dividing L under a conservative VMEM
    budget (sized for v7x's 64 MiB per-TC VMEM with headroom)."""
    if L % 128 != 0:
        return L  # block must equal the full dim when not 128-aligned
    per_l = (2 * N * C * itemsize          # double-buffered latent block
             + (N + 4) * C * 4             # in-kernel f32 [C, TILE_L] slabs
             + 4 * N * 4)                  # [1, TILE_L] logits/softmax rows
    tl = int((budget_bytes // per_l) // 128 * 128)
    if cap is not None:
        tl = min(tl, max(128, (int(cap) // 128) * 128))
    tl = max(128, min(tl, L))
    while L % tl:
        tl -= 128
    return tl


def adafusor_forward(latent, params, activation="ReLU", *,
                     matmul_dtype=None, max_tile_l=None):
    """latent: [N, C, L] (PyTorch layout). Returns [C, L] float32."""
    N, C, L = latent.shape
    if matmul_dtype is None:
        matmul_dtype = jnp.float32
    matmul_dtype = jnp.dtype(matmul_dtype)

    lat = latent.astype(matmul_dtype)              # no wrapper transpose
    W1, b1, w2, b2, W3, b3 = (params[k] for k in ("W1", "b1", "w2", "b2", "W3", "b3"))

    # Channels-first => y = W @ x: torch [out, in] weights are used directly.
    w1x = W1[:, :C].astype(matmul_dtype)           # [C, C]   latent block
    w1mv = W1[:, C:].astype(matmul_dtype)          # [C, 2C]  fused mean|var block
    b1c = b1.reshape(C, 1).astype(jnp.float32)
    w2c = w2.reshape(C, 1).astype(matmul_dtype)    # [C, 1]
    b2s = b2.reshape(1).astype(jnp.float32)        # scalar -> SMEM
    w3m = W3.astype(matmul_dtype)                  # [C, C]
    b3c = b3.reshape(C, 1).astype(jnp.float32)

    tile_l = _pick_tile_l(L, N, C, matmul_dtype.itemsize, cap=max_tile_l)
    grid = (pl.cdiv(L, tile_l),)

    def fixed(shape):
        nd = len(shape)
        return pl.BlockSpec(shape, lambda i, _nd=nd: (0,) * _nd)

    in_specs = [
        pl.BlockSpec((N, C, tile_l), lambda i: (0, 0, i)),          # latent stream
        fixed((C, C)),                                              # w1x
        fixed((C, 2 * C)),                                          # w1mv
        fixed((C, 1)),                                              # b1
        fixed((C, 1)),                                              # w2
        pl.BlockSpec(memory_space=pltpu.MemorySpace.SMEM),          # b2 scalar
        fixed((C, C)),                                              # w3
        fixed((C, 1)),                                              # b3
    ]
    out_specs = pl.BlockSpec((C, tile_l), lambda i: (0, i))

    kernel = functools.partial(adafusor_kernel, activation=activation)
    out = pl.pallas_call(
        kernel,
        grid=grid,
        in_specs=in_specs,
        out_specs=out_specs,
        out_shape=jax.ShapeDtypeStruct((C, L), jnp.float32),
        compiler_params=pltpu.CompilerParams(
            dimension_semantics=("parallel",),          # shard L tiles across TCs (v7x)
            vmem_limit_bytes=48 * 1024 * 1024,          # headroom under v7x's 64 MiB
        ),
    )(lat, w1x, w1mv, b1c, w2c, b2s, w3m, b3c)
    return out                                          # [C, L]


def adafusor_ref(latent, params, activation="ReLU"):
    """Pure-JAX reference mirroring the PyTorch forward exactly."""
    act = ((lambda x: jnp.maximum(x, 0.0)) if activation == "ReLU"
           else (lambda x: jax.nn.gelu(x, approximate=False)))
    mean = jnp.mean(latent, axis=0)
    var = jnp.var(latent, axis=0, ddof=1)
    mean_r = jnp.broadcast_to(mean, latent.shape)
    var_r = jnp.broadcast_to(var, latent.shape)
    feat = jnp.concatenate([latent, mean_r, var_r], axis=1).transpose(0, 2, 1)
    gf = act(feat @ params["W1"].T + params["b1"])
    wl = act(gf @ params["w2"].T + params["b2"])
    w = jax.nn.softmax(wl, axis=0)
    wg = jnp.sum(gf * w, axis=0)
    out = act(wg @ params["W3"].T + params["b3"])
    return out.T


def init_params(key, latent_size):
    ks = jax.random.split(key, 6)
    s = 0.1
    return {
        "W1": s * jax.random.normal(ks[0], (latent_size, 3 * latent_size), jnp.float32),
        "b1": s * jax.random.normal(ks[1], (latent_size,), jnp.float32),
        "w2": s * jax.random.normal(ks[2], (1, latent_size), jnp.float32),
        "b2": s * jax.random.normal(ks[3], (1,), jnp.float32),
        "W3": s * jax.random.normal(ks[4], (latent_size, latent_size), jnp.float32),
        "b3": s * jax.random.normal(ks[5], (latent_size,), jnp.float32),
    }


if __name__ == "__main__":
    activation = "ReLU"
    root = jax.random.PRNGKey(0)
    k_in, k_p, k_in2 = jax.random.split(root, 3)

    # Case 1: pipelined path — L multiple of 128, tile cap forces 4 L-tiles.
    N, C, L = 2, 32, 512
    latent = jax.random.normal(k_in, (N, C, L), jnp.float32)
    params = init_params(k_p, C)
    out = jax.block_until_ready(
        adafusor_forward(latent, params, activation, max_tile_l=128))
    ref = jax.block_until_ready(adafusor_ref(latent, params, activation))
    assert out.shape == (C, L), out.shape
    assert jnp.allclose(out, ref, atol=2e-3, rtol=2e-3), \
        float(jnp.max(jnp.abs(out - ref)))

    # Case 2: small / non-128-multiple L -> single whole-L tile fallback.
    N2, L2 = 3, 40
    latent2 = jax.random.normal(k_in2, (N2, C, L2), jnp.float32)
    out2 = jax.block_until_ready(adafusor_forward(latent2, params, activation))
    ref2 = adafusor_ref(latent2, params, activation)
    assert out2.shape == (C, L2), out2.shape
    assert jnp.allclose(out2, ref2, atol=2e-3, rtol=2e-3), \
        float(jnp.max(jnp.abs(out2 - ref2)))

    # Case 3: bf16 matmul operands (halves HBM bytes of the latent stream on
    # v6e/v7x); f32 accumulation + f32 stats/softmax, so loose tolerance only.
    out3 = jax.block_until_ready(
        adafusor_forward(latent, params, activation,
                         matmul_dtype=jnp.bfloat16, max_tile_l=128))
    assert jnp.allclose(out3, ref, atol=5e-2, rtol=5e-2), \
        float(jnp.max(jnp.abs(out3 - ref)))

    print("KERNEL_OK")
</pallas_src>

<mosaic_0001>
module attributes {stable_mosaic.version = 11 : i64} {
  func.func @adafusor_kernel(%arg0: i32, %arg1: memref<2x32x128xf32, #tpu.memory_space<vmem>>, %arg2: memref<32x32xf32, #tpu.memory_space<vmem>>, %arg3: memref<32x64xf32, #tpu.memory_space<vmem>>, %arg4: memref<32x1xf32, #tpu.memory_space<vmem>>, %arg5: memref<32x1xf32, #tpu.memory_space<vmem>>, %arg6: memref<1xf32, #tpu.memory_space<smem>>, %arg7: memref<32x32xf32, #tpu.memory_space<vmem>>, %arg8: memref<32x1xf32, #tpu.memory_space<vmem>>, %arg9: memref<32x128xf32, #tpu.memory_space<vmem>>) attributes {dimension_semantics = [#tpu.dimension_semantics<parallel>], iteration_bounds = array<i64: 4>, scalar_prefetch = 0 : i64, scratch_operands = 0 : i64, tpu.core_type = #tpu.core_type<tc>, window_params = [{transform_indices = @transform_0, window_bounds = array<i64: 2, 32, 128>}, {pipeline_mode = #tpu.pipeline_mode<synchronous>, transform_indices = @transform_1, window_bounds = array<i64: 32, 32>}, {pipeline_mode = #tpu.pipeline_mode<synchronous>, transform_indices = @transform_2, window_bounds = array<i64: 32, 64>}, {pipeline_mode = #tpu.pipeline_mode<synchronous>, transform_indices = @transform_3, window_bounds = array<i64: 32, 1>}, {pipeline_mode = #tpu.pipeline_mode<synchronous>, transform_indices = @transform_4, window_bounds = array<i64: 32, 1>}, {transform_indices = @transform_5, window_bounds = array<i64: 1>}, {pipeline_mode = #tpu.pipeline_mode<synchronous>, transform_indices = @transform_6, window_bounds = array<i64: 32, 32>}, {pipeline_mode = #tpu.pipeline_mode<synchronous>, transform_indices = @transform_7, window_bounds = array<i64: 32, 1>}, {transform_indices = @transform_8, window_bounds = array<i64: 32, 128>}]} {
    %c0 = arith.constant 0 : index
    %c0_0 = arith.constant 0 : index
    %c0_1 = arith.constant 0 : index
    %0 = vector.load %arg1[%c0, %c0_0, %c0_1] : memref<2x32x128xf32, #tpu.memory_space<vmem>>, vector<1x32x128xf32>
    %1 = vector.shape_cast %0 : vector<1x32x128xf32> to vector<32x128xf32>
    %c1 = arith.constant 1 : index
    %c0_2 = arith.constant 0 : index
    %c0_3 = arith.constant 0 : index
    %2 = vector.load %arg1[%c1, %c0_2, %c0_3] : memref<2x32x128xf32, #tpu.memory_space<vmem>>, vector<1x32x128xf32>
    %3 = vector.shape_cast %2 : vector<1x32x128xf32> to vector<32x128xf32>
    %4 = arith.addf %1, %3 : vector<32x128xf32>
    %cst = arith.constant 5.000000e-01 : f32
    %5 = vector.broadcast %cst : f32 to vector<32x128xf32>
    %6 = arith.mulf %4, %5 : vector<32x128xf32>
    %7 = arith.subf %1, %6 : vector<32x128xf32>
    %8 = arith.subf %1, %6 : vector<32x128xf32>
    %9 = arith.mulf %7, %8 : vector<32x128xf32>
    %10 = arith.subf %3, %6 : vector<32x128xf32>
    %11 = arith.subf %3, %6 : vector<32x128xf32>
    %12 = arith.mulf %10, %11 : vector<32x128xf32>
    %13 = arith.addf %9, %12 : vector<32x128xf32>
    %cst_4 = arith.constant 1.000000e+00 : f32
    %14 = vector.broadcast %cst_4 : f32 to vector<32x128xf32>
    %15 = arith.mulf %13, %14 : vector<32x128xf32>
    %16 = tpu.concatenate %6, %15 in 0 : vector<32x128xf32>, vector<32x128xf32> -> vector<64x128xf32>
    %c0_5 = arith.constant 0 : index
    %c0_6 = arith.constant 0 : index
    %17 = vector.load %arg3[%c0_5, %c0_6] : memref<32x64xf32, #tpu.memory_space<vmem>>, vector<32x64xf32>
    %cst_7 = arith.constant dense<0.000000e+00> : vector<32x128xf32>
    %18 = tpu.matmul %17, %16, %cst_7 {dimension_numbers = #tpu.dot_dimension_numbers<[1], [0], [0], [1], [0, 0, 1, 1], [], []>} : vector<32x64xf32>, vector<64x128xf32>, vector<32x128xf32> -> vector<32x128xf32>
    %c0_8 = arith.constant 0 : index
    %c0_9 = arith.constant 0 : index
    %19 = vector.load %arg4[%c0_8, %c0_9] : memref<32x1xf32, #tpu.memory_space<vmem>>, vector<32x1xf32>
    %20 = vector.broadcast %19 : vector<32x1xf32> to vector<32x128xf32>
    %21 = arith.addf %18, %20 : vector<32x128xf32>
    %c0_10 = arith.constant 0 : index
    %c0_11 = arith.constant 0 : index
    %22 = vector.load %arg2[%c0_10, %c0_11] : memref<32x32xf32, #tpu.memory_space<vmem>>, vector<32x32xf32>
    %cst_12 = arith.constant dense<0.000000e+00> : vector<32x128xf32>
    %23 = tpu.matmul %22, %1, %cst_12 {dimension_numbers = #tpu.dot_dimension_numbers<[1], [0], [0], [1], [0, 0, 1, 1], [], []>} : vector<32x32xf32>, vector<32x128xf32>, vector<32x128xf32> -> vector<32x128xf32>
    %24 = arith.addf %23, %21 : vector<32x128xf32>
    %cst_13 = arith.constant 0.000000e+00 : f32
    %25 = vector.broadcast %cst_13 : f32 to vector<32x128xf32>
    %26 = arith.maximumf %24, %25 : vector<32x128xf32>
    %c0_14 = arith.constant 0 : index
    %c0_15 = arith.constant 0 : index
    %27 = vector.load %arg2[%c0_14, %c0_15] : memref<32x32xf32, #tpu.memory_space<vmem>>, vector<32x32xf32>
    %cst_16 = arith.constant dense<0.000000e+00> : vector<32x128xf32>
    %28 = tpu.matmul %27, %3, %cst_16 {dimension_numbers = #tpu.dot_dimension_numbers<[1], [0], [0], [1], [0, 0, 1, 1], [], []>} : vector<32x32xf32>, vector<32x128xf32>, vector<32x128xf32> -> vector<32x128xf32>
    %29 = arith.addf %28, %21 : vector<32x128xf32>
    %cst_17 = arith.constant 0.000000e+00 : f32
    %30 = vector.broadcast %cst_17 : f32 to vector<32x128xf32>
    %31 = arith.maximumf %29, %30 : vector<32x128xf32>
    %c0_18 = arith.constant 0 : index
    %c0_19 = arith.constant 0 : index
    %32 = vector.load %arg5[%c0_18, %c0_19] : memref<32x1xf32, #tpu.memory_space<vmem>>, vector<32x1xf32>
    %c0_20 = arith.constant 0 : index
    %33 = memref.load %arg6[%c0_20] : memref<1xf32, #tpu.memory_space<smem>>
    %34 = vector.broadcast %32 : vector<32x1xf32> to vector<32x128xf32>
    %35 = arith.mulf %26, %34 : vector<32x128xf32>
    %cst_21 = arith.constant dense<0.000000e+00> : vector<128xf32>
    %36 = vector.multi_reduction <add>, %35, %cst_21 [0] : vector<32x128xf32> to vector<128xf32>
    %37 = vector.shape_cast %36 : vector<128xf32> to vector<1x128xf32>
    %38 = vector.broadcast %33 : f32 to vector<1x128xf32>
    %39 = arith.addf %37, %38 : vector<1x128xf32>
    %cst_22 = arith.constant 0.000000e+00 : f32
    %40 = vector.broadcast %cst_22 : f32 to vector<1x128xf32>
    %41 = arith.maximumf %39, %40 : vector<1x128xf32>
    %42 = vector.broadcast %32 : vector<32x1xf32> to vector<32x128xf32>
    %43 = arith.mulf %31, %42 : vector<32x128xf32>
    %cst_23 = arith.constant dense<0.000000e+00> : vector<128xf32>
    %44 = vector.multi_reduction <add>, %43, %cst_23 [0] : vector<32x128xf32> to vector<128xf32>
    %45 = vector.shape_cast %44 : vector<128xf32> to vector<1x128xf32>
    %46 = vector.broadcast %33 : f32 to vector<1x128xf32>
    %47 = arith.addf %45, %46 : vector<1x128xf32>
    %cst_24 = arith.constant 0.000000e+00 : f32
    %48 = vector.broadcast %cst_24 : f32 to vector<1x128xf32>
    %49 = arith.maximumf %47, %48 : vector<1x128xf32>
    %50 = arith.maximumf %41, %49 : vector<1x128xf32>
    %51 = arith.subf %41, %50 : vector<1x128xf32>
    %52 = math.exp %51 : vector<1x128xf32>
    %53 = arith.subf %49, %50 : vector<1x128xf32>
    %54 = math.exp %53 : vector<1x128xf32>
    %55 = arith.addf %52, %54 : vector<1x128xf32>
    %56 = arith.divf %52, %55 : vector<1x128xf32>
    %57 = vector.broadcast %56 : vector<1x128xf32> to vector<32x128xf32>
    %58 = arith.mulf %26, %57 : vector<32x128xf32>
    %59 = arith.divf %54, %55 : vector<1x128xf32>
    %60 = vector.broadcast %59 : vector<1x128xf32> to vector<32x128xf32>
    %61 = arith.mulf %31, %60 : vector<32x128xf32>
    %62 = arith.addf %58, %61 : vector<32x128xf32>
    %c0_25 = arith.constant 0 : index
    %c0_26 = arith.constant 0 : index
    %63 = vector.load %arg7[%c0_25, %c0_26] : memref<32x32xf32, #tpu.memory_space<vmem>>, vector<32x32xf32>
    %cst_27 = arith.constant dense<0.000000e+00> : vector<32x128xf32>
    %64 = tpu.matmul %63, %62, %cst_27 {dimension_numbers = #tpu.dot_dimension_numbers<[1], [0], [0], [1], [0, 0, 1, 1], [], []>} : vector<32x32xf32>, vector<32x128xf32>, vector<32x128xf32> -> vector<32x128xf32>
    %c0_28 = arith.constant 0 : index
    %c0_29 = arith.constant 0 : index
    %65 = vector.load %arg8[%c0_28, %c0_29] : memref<32x1xf32, #tpu.memory_space<vmem>>, vector<32x1xf32>
    %66 = vector.broadcast %65 : vector<32x1xf32> to vector<32x128xf32>
    %67 = arith.addf %64, %66 : vector<32x128xf32>
    %cst_30 = arith.constant 0.000000e+00 : f32
    %68 = vector.broadcast %cst_30 : f32 to vector<32x128xf32>
    %69 = arith.maximumf %67, %68 : vector<32x128xf32>
    %c0_31 = arith.constant 0 : index
    %c0_32 = arith.constant 0 : index
    %70 = vector.load %arg9[%c0_31, %c0_32] : memref<32x128xf32, #tpu.memory_space<vmem>>, vector<32x128xf32>
    tpu.vector_store %arg9[%c0_31, %c0_32], %69 {strides = array<i32>} : memref<32x128xf32, #tpu.memory_space<vmem>>, vector<32x128xf32>,
    return
  }
  func.func @transform_0(%arg0: i32) -> (i32, i32, i32) {
    %c0_i32 = arith.constant 0 : i32
    %c0_i32_0 = arith.constant 0 : i32
    %c0_i32_1 = arith.constant 0 : i32
    return %c0_i32, %c0_i32_0, %arg0 : i32, i32, i32
  }
  func.func @transform_1(%arg0: i32) -> (i32, i32) {
    %c0_i32 = arith.constant 0 : i32
    %c0_i32_0 = arith.constant 0 : i32
    %c0_i32_1 = arith.constant 0 : i32
    return %c0_i32, %c0_i32_0 : i32, i32
  }
  func.func @transform_2(%arg0: i32) -> (i32, i32) {
    %c0_i32 = arith.constant 0 : i32
    %c0_i32_0 = arith.constant 0 : i32
    %c0_i32_1 = arith.constant 0 : i32
    return %c0_i32, %c0_i32_0 : i32, i32
  }
  func.func @transform_3(%arg0: i32) -> (i32, i32) {
    %c0_i32 = arith.constant 0 : i32
    %c0_i32_0 = arith.constant 0 : i32
    %c0_i32_1 = arith.constant 0 : i32
    return %c0_i32, %c0_i32_0 : i32, i32
  }
  func.func @transform_4(%arg0: i32) -> (i32, i32) {
    %c0_i32 = arith.constant 0 : i32
    %c0_i32_0 = arith.constant 0 : i32
    %c0_i32_1 = arith.constant 0 : i32
    return %c0_i32, %c0_i32_0 : i32, i32
  }
  func.func @transform_5(%arg0: i32) -> i32 {
    %c0_i32 = arith.constant 0 : i32
    %c0_i32_0 = arith.constant 0 : i32
    return %c0_i32 : i32
  }
  func.func @transform_6(%arg0: i32) -> (i32, i32) {
    %c0_i32 = arith.constant 0 : i32
    %c0_i32_0 = arith.constant 0 : i32
    %c0_i32_1 = arith.constant 0 : i32
    return %c0_i32, %c0_i32_0 : i32, i32
  }
  func.func @transform_7(%arg0: i32) -> (i32, i32) {
    %c0_i32 = arith.constant 0 : i32
    %c0_i32_0 = arith.constant 0 : i32
    %c0_i32_1 = arith.constant 0 : i32
    return %c0_i32, %c0_i32_0 : i32, i32
  }
  func.func @transform_8(%arg0: i32) -> (i32, i32) {
    %c0_i32 = arith.constant 0 : i32
    %c0_i32_0 = arith.constant 0 : i32
    return %c0_i32, %arg0 : i32, i32
  }
}

</mosaic_0001>

<bundles_post_ra>
// kernel: tpu_custom_call.1
= control target key start
LH: loop header
LB: loop body
LE: loop exit
PB: predicated region body
PF: predicated region fallthrough
CT: control target
= control target key end

     0   :  { %s1655_s0 = inlined_call_operand.hbm [shape: f32[2,32,512], index: 0, kind: input, shape index: {}]   ;;  %s1656_s1 = inlined_call_operand.vmem [shape: f32[32,32], index: 1, kind: input, shape index: {}]   ;;  %s1657_s2 = inlined_call_operand.vmem [shape: f32[32,64], index: 2, kind: input, shape index: {}]   ;;  %s1658_s3 = inlined_call_operand.vmem [shape: f32[32,1], index: 3, kind: input, shape index: {}]   ;;  %s1659_s4 = inlined_call_operand.vmem [shape: f32[32,1], index: 4, kind: input, shape index: {}]   ;;  %s1660_s5 = inlined_call_operand.<no memory space> [shape: f32[1], index: 5, kind: input, shape index: {}]   ;;  %s1661_s6 = inlined_call_operand.vmem [shape: f32[32,32], index: 6, kind: input, shape index: {}]   ;;  %s1662_s7 = inlined_call_operand.vmem [shape: f32[32,1], index: 7, kind: input, shape index: {}]   ;;  %s1663_s8 = inlined_call_operand.hbm [shape: f32[32,512], index: 8, kind: output, shape index: {}]  }
   0x1   :  { %13 = sst [smem:[#allocation2]] %s1660_s5 }
   0x2   :  { %14 = vsyncpa [#allocation4], 0 }
   0x3   :  { %16 = vsyncpa [#allocation4 + $0x1], 0 }
   0x4   :  { %17 = vsyncpa [#allocation5], 0 }
   0x5   :  { %19 = vsyncpa [#allocation5 + $0x1], 0  ;;  %s1372_s29 = smov 0   ;;  %s1374_s30 = smov 0  }
   0x6   :  { %s1376_s9 = smov 0   ;;  %s1378_s10 = smov 0  }
   0x7 LB: > { %s1393_s5 = sadd.s32 4294967295, %s1313_s10   ;;  %s980_s11 = sadd.s32 4294967294, %s1313_s10   ;;  %s1313_s10 = sphi %s1378_s10, %s1676_s10   ;;  %s1309_s9 = sphi %s1376_s9, %s1675_s9   ;;  %s1305_s30 = sphi %s1374_s30, %s1674_s30   ;;  %s1301_s29 = sphi %s1372_s29, %s1673_s29  }
   0x8   : > { %s1397_s12 = sadd.s32 1, %s1313_s10   ;;  %s32_s13 = sadd.s32 1, %s1309_s9 }
   0x9   : > { %s29_s14 = ssub.s32 %s1313_s10, %s1397_s12  ;;  %p39_p0 = scmp.ne.s32.totalorder %s1309_s9, %s1305_s30 }
   0xa   : > { %p30_p1 = scmp.eq.s32.totalorder %s29_s14, 0  ;;  %p40_p2 = scmp.eq.s32.totalorder %s1313_s10, 0 }
   0xb   : > { %p45_p3 = scmp.ne.s32.totalorder %s1305_s30, %s1301_s29  ;;  %p46_p4 = scmp.eq.s32.totalorder %s1393_s5, 0 }
   0xc   : > { %s1409_s15 = scalar_select %p30_p1, %s1309_s9, %s32_s13  }
   0xd   : > { %p1411_p5 = por %p40_p2, %p39_p0  ;;  %p1415_p6 = por %p46_p4, %p45_p3 }
   0xe   : > { %p216_p7 = scmp.eq.s32.totalorder %s1393_s5, 3  ;;  %p222_p8 = scmp.eq.s32.totalorder %s980_s11, 3 }
   0xf   : > { %p1168_p9 = scmp.lt.s32.totalorder %s1313_s10, 4  ;;  %s263_s20 = sand.u32 1, %s1309_s9  }
  0x10   : > { %p1421_p10 = por %p216_p7, %p39_p0  ;;  %p1425_p11 = por %p222_p8, %p45_p3 }
  0x11   : > { %s984_s21 = sshll.u32 %s1313_s10, 7  ;;  %s983_s22 = sshll.u32 %s263_s20, 6 }
  0x12   : > { %s1667_s18 = scalar_select %p1421_p10, 1, 0 }
  0x13   : > { %s1668_s19 = scalar_select %p1425_p11, 1, 0 }
  0x14   : > { %s1434_s25 = scalar_lea.hbm %s1655_s0, %s984_s21  ;;  %s267_s26 = scalar_lea.vmem [#allocation3], %s983_s22 }
  0x15   : > { %s273_s27 = sshll.u32 %s267_s26, 4  ;;  %p1438_p12 = pnand %p1168_p9, %p1411_p5  ;;  %s1442_s27 = int_to_ptr.vmem [resolvable:$true] %s273_s27 }
  0x16   : > { %s1445_s11 = scalar_lea.sflag [#allocation4], %s263_s20  ;;  %s1217_s13 = scalar_lea.hbm %s1434_s25, 1024 }
  0x17   : > { %p1218_p0 = scmp.ne.s32.totalorder %s1434_s25, %s1217_s13  ;;  %p1219_p1 = pneg %p1438_p12 }
  0x18   : > { %s1222_s21 = scalar_lea.hbm %s1655_s0, 4096  ;;  %p1223_p4 = scmp.lt.u32.totalorder %s1434_s25, %s1655_s0 }
  0x19   : > { %p1220_p2 = pnand %p1219_p1, %p1218_p0  ;;  %p1224_p5 = scmp.lt.u32.totalorder %s1222_s21, %s1217_s13 }
  0x1a   : > { %p1226_p8 = scmp.lt.u32.totalorder %s1217_s13, %s1434_s25 }
  0x1b   : > { %p1221_p3 = pneg %p1220_p2  ;;  %p1225_p7 = por %p1224_p5, %p1223_p4 }
  0x1d   : > { %p1227_p9 = por %p1226_p8, %p1225_p7 }
  0x1f   : > { %p1228_p13 = pnand %p1227_p9, %p1221_p3 }
  0x21   : > { %1231 = shalt.err (!%p1228_p13)
}
  0x22   : > { %s1232_s20 = scalar_lea.vmem %s1442_s27, 1024  ;;  %s1315_s24 = smov [#allocation3]  }
  0x23   : > { %p1233_p0 = scmp.ne.s32.totalorder %s1442_s27, %s1232_s20  ;;  %s1237_s26 = sshll.u32 %s1315_s24, 4  ;;  %s1238_s26 = int_to_ptr.vmem [resolvable:$false] %s1237_s26 }
  0x24   : > { %s1239_s14 = scalar_lea.vmem %s1238_s26, 2048  ;;  %p1240_p10 = scmp.lt.s32.totalorder %s1442_s27, %s1238_s26 }
  0x25   : > { %p1235_p2 = pnand %p1233_p0, %p1219_p1  ;;  %p1241_p4 = scmp.lt.s32.totalorder %s1239_s14, %s1232_s20 }
  0x27   : > { %p1236_p11 = pneg %p1235_p2  ;;  %p1242_p5 = por %p1241_p4, %p1240_p10 }
  0x29   : > { %p1243_p7 = pnand %p1242_p5, %p1236_p11 }
  0x2b   : > { %1246 = shalt.err (!%p1243_p7)
}
  0x2c   : > { %s1316_s13 = smov 512   ;;  %s1317_s16 = smov 128  }
  0x2d   : > { %s1318_s21 = smov 8   ;;  %p281_p13 = scmp.lt.s32.totalorder %s1313_s10, 5 }
  0x2e   : > { %1163 = dma.hbm_to_vmem [thread:$0]  (!%p1438_p12), %s1434_s25, 1024, %s1442_s27, %s1445_s11, %s1316_s13, %s1317_s16, %s1318_s21  }
  0x2f   : > { %p1670_p1 = scmp.ge.s32.totalorder %s1313_s10, 1 }
  0x31   : > { %p282_p3 = pnand %p1670_p1, %p281_p13 }
  0x32   : > { %s1477_s22 = sand.u32 (!%p282_p3), 1, %s1305_s30  }
  0x33   : > { %285 = sbr.rel (%p282_p3) target bundleno = 609 (0x261), region = 52  ;;  %s986_s23 = sshll.u32 (!%p282_p3), %s1477_s22, 6 }
  0x34   : > { %s288_s20 = scalar_lea.sflag (!%p282_p3), [#allocation4], %s1477_s22  ;;  %s291_s24 = scalar_lea.vmem (!%p282_p3), [#allocation3], %s986_s23 }
  0x3a   : > { %1292 = dma.done.wait (%p1415_p6), %s288_s20, 1024  }
  0x3b   : > { %1294 = vsyncadd (%p1415_p6), %s288_s20, 4294966272  ;;  %v1319_v0 = vmov 0   ;;  %v324_v1 = vld [vmem:[%s291_s24] sm:$0xff]  ;;  %v325_v2 = vld [vmem:[%s291_s24 + $0x8] sm:$0xff]  ;;  %vm491_vm0 = vcmask 261120   ;;  %vm389_vm1 = vcmask 523264  }
  0x3c   : > { %1209 = vset.pattern.permute.xlu0 %v1319_v0  ;;  %1210 = vset.pattern.permute.xlu1 %v1319_v0  ;;  %v988_v3 = vld [vmem:[%s291_s24 + $0x20] sm:$0xff]  ;;  %v989_v4 = vld [vmem:[%s291_s24 + $0x28] sm:$0xff]  ;;  %v1128_v6 = vpack.c.bf16 %v325_v2, %v324_v1  ;;  %v326_v7 = vld [vmem:[%s291_s24 + $0x10] sm:$0xff]  ;;  %s686_s26 = sld [smem:[#allocation2]]  ;;  %s987_s23 = sshll.u32 %s1477_s22, 5 }
  0x3d   : > { %v333_v5 = vadd.f32 %v988_v3, %v324_v1  ;;  %v327_v8 = vld [vmem:[%s291_s24 + $0x18] sm:$0xff]  ;;  %v334_v9 = vadd.f32 %v989_v4, %v325_v2  ;;  %v990_v10 = vld [vmem:[%s291_s24 + $0x30] sm:$0xff]  ;;  %v1488_v13 = vld [vmem:[%s1656_s1] sm:$0xff]  ;;  %v1136_v18 = vpack.c.bf16 %v989_v4, %v988_v3  ;;  %s323_s20 = scalar_lea.vmem [#allocation6], %s987_s23  ;;  %s1009_s25 = sshll.u32 %s1393_s5, 7 }
  0x3e   : > { %v991_v11 = vld [vmem:[%s291_s24 + $0x38] sm:$0xff]  ;;  %v1132_v12 = vpack.c.bf16 %v327_v8, %v326_v7  ;;  %1129 = vmatprep.subr.bf16.mxu1 %v1128_v6  ;;  %v335_v15 = vadd.f32 %v990_v10, %v326_v7  ;;  %1078 = vmatprep.mubr.msk.f32.mxu1 %vm491_vm0, %v1488_v13  ;;  %v361_v20 = vld [vmem:[%s1657_s2] sm:$0xff]  ;;  %v367_v26 = vld [vmem:[%s1658_s3 + $0x10] sm:$0xff]  ;;  %s907_s24 = sshll.u32 %s323_s20, 4  ;;  %s1612_s28 = scalar_lea.hbm %s1663_s8, %s1009_s25  ;;  %s1607_s24 = int_to_ptr.vmem [resolvable:$true] %s907_s24 }
  0x3f   : > { %v337_v14 = vmul.f32 0.5, %v333_v5  ;;  %v336_v16 = vadd.f32 %v991_v11, %v327_v8  ;;  %v338_v17 = vmul.f32 0.5, %v334_v9  ;;  %1131 = vmatpush3.bf16.msra.mxu1 %v1128_v6  ;;  %v1140_v19 = vpack.c.bf16 %v991_v11, %v990_v10  ;;  %1064 = vmatprep.mubr.msk.f32.mxu0 %vm389_vm1, %v361_v20  ;;  %v365_v25 = vld [vmem:[%s1658_s3] sm:$0xff]  ;;  %v366_v34 = vld [vmem:[%s1658_s3 + $0x8] sm:$0xff]  ;;  %v368_v39 = vld [vmem:[%s1658_s3 + $0x18] sm:$0xff]  ;;  %s895_s5 = scalar_lea.sflag [#allocation5], %s1477_s22 }
  0x40   : > { %v339_v21 = vmul.f32 0.5, %v335_v15  ;;  %1133 = vmatprep.subr.bf16.mxu1 %v1132_v12  ;;  %371 = vperm.xlu0 %1209, %v365_v25   ;;  %v488_v37 = vld [vmem:[%s1656_s1 + $0x8] sm:$0xff]  ;;  %v489_v43 = vld [vmem:[%s1656_s1 + $0x10] sm:$0xff]  ;;  %v682_v48 = vld [vmem:[%s1659_s4] sm:$0xff]  ;;  %s1247_s11 = scalar_lea.vmem %s1607_s24, 512  ;;  %p1671_p10 = scmp.ne.s32.totalorder %s1667_s18, 0 }
  0x41   : > { %v340_v22 = vmul.f32 0.5, %v336_v16  ;;  %v341_v23 = vsub.f32 %v324_v1, %v337_v14  ;;  %v349_v24 = vsub.f32 %v988_v3, %v337_v14  ;;  %v1112_v27 = vpack.c.bf16 %v338_v17, %v337_v14  ;;  %381 = vperm.xlu1 %1210, %v367_v26   ;;  %v490_v51 = vld [vmem:[%s1656_s1 + $0x18] sm:$0xff]  ;;  %v683_v52 = vld [vmem:[%s1659_s4 + $0x8] sm:$0xff]  ;;  %v684_v55 = vld [vmem:[%s1659_s4 + $0x10] sm:$0xff]  ;;  %p1248_p6 = scmp.ne.s32.totalorder %s1607_s24, %s1247_s11 }
  0x42   : > { %v342_v28 = vsub.f32 %v325_v2, %v338_v17  ;;  %v350_v29 = vsub.f32 %v989_v4, %v338_v17  ;;  %v343_v33 = vsub.f32 %v326_v7, %v339_v21  ;;  %v351_v42 = vsub.f32 %v990_v10, %v339_v21  ;;  %v685_v57 = vld [vmem:[%s1659_s4 + $0x18] sm:$0xff]  ;;  %v765_v58 = vld [vmem:[%s1662_s7] sm:$0xff]  ;;  %v766_v59 = vld [vmem:[%s1662_s7 + $0x8] sm:$0xff] }
  0x43   : > { %v1116_v30 = vpack.c.bf16 %v340_v22, %v339_v21  ;;  %v345_v31 = vmul.f32 %v341_v23, %v341_v23  ;;  %v353_v32 = vmul.f32 %v349_v24, %v349_v24  ;;  %1113 = vmatprep.subr.bf16.mxu0 %v1112_v27  ;;  %1135 = vmatpush3.bf16.msra.mxu1 %v1132_v12  ;;  %v362_v60 = vld [vmem:[%s1657_s2 + $0x8] sm:$0xff]  ;;  %v363_v61 = vld [vmem:[%s1657_s2 + $0x10] sm:$0xff]  ;;  %v768_v63 = vld [vmem:[%s1662_s7 + $0x18] sm:$0xff]  ;;  %p1249_p11 = pnand %p1248_p6, %p1671_p10 }
  0x44   : > { %v346_v35 = vmul.f32 %v342_v28, %v342_v28  ;;  %v354_v36 = vmul.f32 %v350_v29, %v350_v29  ;;  %v344_v38 = vsub.f32 %v327_v8, %v340_v22  ;;  %1115 = vmatpush3.bf16.msra.mxu0 %v1112_v27  ;;  %1137 = vmatprep.subr.bf16.mxu1 %v1136_v18  ;;  %v767_v62 = vld [vmem:[%s1662_s7 + $0x10] sm:$0xff]  ;;  %v364_v0 = vld [vmem:[%s1657_s2 + $0x18] sm:$0xff]  ;;  %v761_v1 = vld [vmem:[%s1661_s6] sm:$0xff] }
  0x45   : > { %v357_v40 = vadd.f32 %v353_v32, %v345_v31  ;;  %v347_v41 = vmul.f32 %v343_v33, %v343_v33  ;;  %1117 = vmatprep.subr.bf16.mxu0 %v1116_v30  ;;  %v352_v46 = vsub.f32 %v991_v11, %v340_v22  ;;  %376 = vperm.xlu0 %1209, %v366_v34   ;;  %v763_v2 = vld [vmem:[%s1661_s6 + $0x10] sm:$0xff]  ;;  %p1250_p12 = pneg %p1249_p11 }
  0x46   : > { %v358_v44 = vadd.f32 %v354_v36, %v346_v35  ;;  %v348_v45 = vmul.f32 %v344_v38, %v344_v38  ;;  %1079 = vmatmul.mubr.msk.f32.vlgmr.msra.gmra.mrb[0].mxu1 %vm491_vm0, %v488_v37  ;;  %v355_v47 = vmul.f32 %v351_v42, %v351_v42  ;;  %386 = vperm.xlu1 %1210, %v368_v39  }
  0x47   : > { %1139 = vmatpush3.bf16.msra.mxu1 %v1136_v18  ;;  %v356_v50 = vmul.f32 %v352_v46, %v352_v46  ;;  %1081 = vmatprep.mubr.msk.f32.mxu1 %vm491_vm0, %v489_v43 }
  0x48   : > { %v1120_v49 = vpack.c.bf16 %v358_v44, %v357_v40  ;;  %1119 = vmatpush3.bf16.msra.mxu0 %v1116_v30  ;;  %v359_v53 = vadd.f32 %v355_v47, %v347_v41  ;;  %1141 = vmatprep.subr.bf16.mxu1 %v1140_v19 }
  0x49   : > { %v360_v54 = vadd.f32 %v356_v50, %v348_v45  ;;  %689 = vperm.xlu0 %1209, %v682_v48  }
  0x4a   : > { %1121 = vmatprep.subr.bf16.mxu0 %v1120_v49  ;;  %1082 = vmatmul.mubr.msk.f32.gmra.mrb[2].mxu1 %vm491_vm0, %v490_v51 }
  0x4b   : > { %694 = vperm.xlu1 %1210, %v683_v52   ;;  %v1124_v56 = vpack.c.bf16 %v360_v54, %v359_v53  ;;  %1143 = vmatpush3.bf16.msra.mxu1 %v1140_v19 }
  0x4c   : > { %1092 = vmatprep.mubr.msk.f32.mxu1 %vm491_vm0, %v1488_v13  ;;  %1123 = vmatpush3.bf16.msra.mxu0 %v1120_v49 }
  0x4d   : > { %1125 = vmatprep.subr.bf16.mxu0 %v1124_v56  ;;  %699 = vperm.xlu0 %1209, %v684_v55  }
  0x4e   : > { %1093 = vmatmul.mubr.msk.f32.vlgmr.msra.gmra.mrb[4].mxu1 %vm491_vm0, %v488_v37 }
  0x4f   : > { %704 = vperm.xlu1 %1210, %v685_v57   ;;  %1095 = vmatprep.mubr.msk.f32.mxu1 %vm491_vm0, %v489_v43 }
  0x50   : > { %1127 = vmatpush3.bf16.msra.mxu0 %v1124_v56 }
  0x51   : > { %771 = vperm.xlu0 %1209, %v765_v58  }
  0x52   : > { %1096 = vmatmul.mubr.msk.f32.gmra.mrb[6].mxu1 %vm491_vm0, %v490_v51 }
  0x53   : > { %776 = vperm.xlu1 %1210, %v766_v59   ;;  %1065 = vmatmul.mubr.msk.f32.vlgmr.msra.gmra.mrb[0].mxu0 %vm389_vm1, %v362_v60 }
  0x54   : > { %1067 = vmatprep.mubr.msk.f32.mxu0 %vm389_vm1, %v363_v61  ;;  %1109 = vmatprep.mubr.msk.f32.mxu1 %vm491_vm0, %v763_v2 }
  0x55   : > { %781 = vperm.xlu0 %1209, %v767_v62  }
  0x57   : > { %786 = vperm.xlu1 %1210, %v768_v63   ;;  %1068 = vmatmul.mubr.msk.f32.gmra.mrb[2].mxu0 %vm389_vm1, %v364_v0 }
  0x58   : > { %1106 = vmatprep.mubr.msk.f32.mxu0 %vm491_vm0, %v761_v1 }
  0xbf   : > { %v372_v6 = vpop.permute.xlu0 %371 }
  0xc0   : > { %v382_v8 = vpop.permute.xlu1 %381 }
  0xc4   : > { %v377_v11 = vpop.permute.xlu0 %376 }
  0xc5   : > { %v387_v12 = vpop.permute.xlu1 %386 }
  0xc8   : > { %v690_v24 = vpop.permute.xlu0 %689 }
  0xca   : > { %v695_v29 = vpop.permute.xlu1 %694 }
  0xcc   : > { %v700_v47 = vpop.permute.xlu0 %699 }
  0xce   : > { %v705_v50 = vpop.permute.xlu1 %704 }
 0x119   : > { %v1080_v3 = vpop.f32.mrb[0].mxu1 }
 0x11a   : > { %v570_v4 = vpop.f32.mrb[1].mxu1 }
 0x11d   : > { %v1083_v5 = vpop.f32.mrb[2].mxu1 }
 0x11e   : > { %v580_v7 = vpop.f32.mrb[3].mxu1 }
 0x121   : > { %v1094_v9 = vpop.f32.mrb[4].mxu1 }
 0x122   : > { %v659_v10 = vpop.f32.mrb[5].mxu1 }
 0x125   : > { %v1097_v13 = vpop.f32.mrb[6].mxu1 }
 0x126   : > { %v1066_v14 = vpop.f32.mrb[0].mxu0  ;;  %v669_v15 = vpop.f32.mrb[7].mxu1 }
 0x127   : > { %v474_v16 = vadd.f32 %v1066_v14, %v377_v11  ;;  %v468_v17 = vpop.f32.mrb[1].mxu0 }
 0x128   : > { %v469_v18 = vadd.f32 %v468_v17, %v372_v6 }
 0x129   : > { %v1569_v19 = vadd.f32 %v1080_v3, %v474_v16  ;;  %v1571_v20 = vadd.f32 %v1094_v9, %v474_v16  ;;  %v720_v3 = vstv %s686_s26  ;;  %s1320_s26 = smov [#allocation6]  }
 0x12a   : > { %v1573_v21 = vadd.f32 %v570_v4, %v469_v18  ;;  %v1575_v22 = vadd.f32 %v659_v10, %v469_v18  ;;  %v1069_v23 = vpop.f32.mrb[2].mxu0  ;;  %s1251_s14 = sshll.u32 %s1320_s26, 4  ;;  %s1252_s14 = int_to_ptr.vmem [resolvable:$false] %s1251_s14 }
 0x12b   : > { %v590_v25 = vmax.f32 %v1569_v19, 0.0  ;;  %v679_v26 = vmax.f32 %v1571_v20, 0.0  ;;  %v484_v27 = vadd.f32 %v1069_v23, %v387_v12  ;;  %v478_v28 = vpop.f32.mrb[3].mxu0  ;;  %v762_v19 = vld [vmem:[%s1661_s6 + $0x8] sm:$0xff]  ;;  %v764_v20 = vld [vmem:[%s1661_s6 + $0x18] sm:$0xff]  ;;  %s1253_s13 = scalar_lea.vmem %s1252_s14, 1024  ;;  %p1254_p8 = scmp.lt.s32.totalorder %s1607_s24, %s1252_s14 }
 0x12c   : > { %v589_v30 = vmax.f32 %v1573_v21, 0.0  ;;  %v678_v31 = vmax.f32 %v1575_v22, 0.0  ;;  %v479_v32 = vadd.f32 %v478_v28, %v382_v8  ;;  %v772_v21 = vpop.permute.xlu0 %771  ;;  %v777_v22 = vpop.permute.xlu1 %776  ;;  %p1255_p9 = scmp.lt.s32.totalorder %s1253_s13, %s1247_s11 }
 0x12d   : > { %v708_v33 = vmul.f32 %v695_v29, %v590_v25  ;;  %v724_v34 = vmul.f32 %v695_v29, %v679_v26  ;;  %v586_v35 = vadd.f32 %v1083_v5, %v484_v27  ;;  %v675_v36 = vadd.f32 %v1097_v13, %v484_v27 }
 0x12e   : > { %v707_v37 = vmul.f32 %v690_v24, %v589_v30  ;;  %v723_v38 = vmul.f32 %v690_v24, %v678_v31  ;;  %v581_v39 = vadd.f32 %v580_v7, %v479_v32  ;;  %v670_v40 = vadd.f32 %v669_v15, %v479_v32  ;;  %p1256_p0 = por %p1255_p9, %p1254_p8 }
 0x12f   : > { %v592_v41 = vmax.f32 %v586_v35, 0.0  ;;  %v681_v42 = vmax.f32 %v675_v36, 0.0 }
 0x130   : > { %v711_v43 = vadd.f32 %v708_v33, %v707_v37  ;;  %v727_v44 = vadd.f32 %v724_v34, %v723_v38  ;;  %v591_v45 = vmax.f32 %v581_v39, 0.0  ;;  %v680_v46 = vmax.f32 %v670_v40, 0.0  ;;  %p1257_p2 = pnand %p1256_p0, %p1250_p12 }
 0x131   : > { %v710_v51 = vmul.f32 %v705_v50, %v592_v41  ;;  %v726_v53 = vmul.f32 %v705_v50, %v681_v42 }
 0x132   : > { %v709_v48 = vmul.f32 %v700_v47, %v591_v45  ;;  %v725_v49 = vmul.f32 %v700_v47, %v680_v46 }
 0x134   : > { %v712_v52 = vadd.f32 %v711_v43, %v709_v48  ;;  %v728_v54 = vadd.f32 %v727_v44, %v725_v49 }
 0x136   : > { %v713_v55 = vadd.f32 %v712_v52, %v710_v51  ;;  %v729_v56 = vadd.f32 %v728_v54, %v726_v53 }
 0x138   : > { %v714_v57 = vrot.slane %v713_v55, 4  ;;  %v730_v58 = vrot.slane %v729_v56, 4 }
 0x13a   : > { %v715_v59 = vadd.f32 %v714_v57, %v713_v55  ;;  %v731_v60 = vadd.f32 %v730_v58, %v729_v56 }
 0x13c   : > { %v716_v61 = vrot.slane %v715_v59, 2  ;;  %v732_v62 = vrot.slane %v731_v60, 2 }
 0x13e   : > { %v717_v63 = vadd.f32 %v716_v61, %v715_v59  ;;  %v733_v0 = vadd.f32 %v732_v62, %v731_v60 }
 0x140   : > { %v718_v1 = vrot.slane %v717_v63, 1  ;;  %v734_v2 = vrot.slane %v733_v0, 1 }
 0x142   : > { %v719_v4 = vadd.f32 %v718_v1, %v717_v63  ;;  %v735_v5 = vadd.f32 %v734_v2, %v733_v0 }
 0x144   : > { %v721_v6 = vadd.f32 %v720_v3, %v719_v4  ;;  %v736_v7 = vadd.f32 %v735_v5, %v720_v3 }
 0x146   : > { %v722_v8 = vmax.f32 %v721_v6, 0.0  ;;  %v737_v9 = vmax.f32 %v736_v7, 0.0 }
 0x148   : > { %v738_v10 = vmax.f32 %v722_v8, %v737_v9 }
 0x14a   : > { %v739_v11 = vsub.f32 %v722_v8, %v738_v10  ;;  %v742_v12 = vsub.f32 %v737_v9, %v738_v10 }
 0x14c   : > { %v740_v13 = vmul.f32 1.442695, %v739_v11  ;;  %v743_v14 = vmul.f32 1.442695, %v742_v12 }
 0x14e   : > { %1211 = vpow2.f32 %v740_v13 }
 0x14f   : > { %1213 = vpow2.f32 %v743_v14 }
 0x158   : > { %v1212_v15 = vpop.eup %1211 }
 0x159   : > { %v1214_v16 = vpop.eup %1213 }
 0x15a   : > { %v745_v17 = vadd.f32 %v1214_v16, %v1212_v15 }
 0x15c   : > { %1215 = vrcp.f32 %v745_v17 }
 0x166   : > { %v1216_v18 = vpop.eup %1215 }
 0x167   : > { %v747_v23 = vmul.f32 %v1216_v18, %v1212_v15  ;;  %v752_v24 = vmul.f32 %v1216_v18, %v1214_v16 }
 0x169   : > { %v750_v27 = vmul.f32 %v747_v23, %v591_v45  ;;  %v751_v28 = vmul.f32 %v747_v23, %v592_v41  ;;  %v755_v29 = vmul.f32 %v752_v24, %v680_v46  ;;  %v756_v32 = vmul.f32 %v752_v24, %v681_v42 }
 0x16a   : > { %v748_v33 = vmul.f32 %v747_v23, %v589_v30  ;;  %v749_v34 = vmul.f32 %v747_v23, %v590_v25  ;;  %v753_v35 = vmul.f32 %v752_v24, %v678_v31  ;;  %v754_v36 = vmul.f32 %v752_v24, %v679_v26  ;;  %v782_v25 = vpop.permute.xlu0 %781  ;;  %v787_v26 = vpop.permute.xlu1 %786 }
 0x16b   : > { %v759_v37 = vadd.f32 %v755_v29, %v750_v27  ;;  %v760_v38 = vadd.f32 %v756_v32, %v751_v28 }
 0x16c   : > { %v757_v39 = vadd.f32 %v753_v35, %v748_v33  ;;  %v758_v40 = vadd.f32 %v754_v36, %v749_v34 }
 0x16d   : > { %v1148_v43 = vpack.c.bf16 %v760_v38, %v759_v37 }
 0x16e   : > { %v1144_v41 = vpack.c.bf16 %v758_v40, %v757_v39 }
 0x170   : > { %1145 = vmatprep.subr.bf16.mxu0 %v1144_v41  ;;  %1152 = vmatprep.subr.bf16.mxu1 %v1144_v41 }
 0x171   : > { %1147 = vmatpush3.bf16.msra.mxu0 %v1144_v41  ;;  %1154 = vmatpush3.bf16.msra.mxu1 %v1144_v41 }
 0x172   : > { %1149 = vmatprep.subr.bf16.mxu0 %v1148_v43  ;;  %1153 = vmatprep.subr.bf16.mxu1 %v1148_v43 }
 0x175   : > { %1151 = vmatpush3.bf16.msra.mxu0 %v1148_v43  ;;  %1155 = vmatpush3.bf16.msra.mxu1 %v1148_v43 }
 0x178   : > { %1107 = vmatmul.mubr.msk.f32.vlgmr.msra.gmra.mrb[4].mxu0 %vm491_vm0, %v762_v19  ;;  %1110 = vmatmul.mubr.msk.f32.vlgmr.msra.gmra.mrb[8].mxu1 %vm491_vm0, %v764_v20 }
 0x24b   : > { %v1108_v30 = vpop.f32.mrb[4].mxu0  ;;  %v1111_v31 = vpop.f32.mrb[8].mxu1 }
 0x24c   : > { %v873_v42 = vadd.f32 %v1108_v30, %v777_v22  ;;  %v883_v44 = vadd.f32 %v1111_v31, %v787_v26  ;;  %v867_v45 = vpop.f32.mrb[5].mxu0  ;;  %v877_v46 = vpop.f32.mrb[9].mxu1 }
 0x24d   : > { %v868_v47 = vadd.f32 %v867_v45, %v772_v21  ;;  %v878_v48 = vadd.f32 %v877_v46, %v782_v25 }
 0x24e   : > { %v887_v49 = vmax.f32 %v873_v42, 0.0  ;;  %v889_v50 = vmax.f32 %v883_v44, 0.0 }
 0x24f   : > { %v886_v51 = vmax.f32 %v868_v47, 0.0  ;;  %v888_v52 = vmax.f32 %v878_v48, 0.0 }
 0x250   : > { %891 = vst [vmem:[%s323_s20 + $0x8] sm:$0xff] %v887_v49  ;;  %893 = vst [vmem:[%s323_s20 + $0x18] sm:$0xff] %v889_v50 }
 0x251   : > { %890 = vst [vmem:[%s323_s20] sm:$0xff] %v886_v51  ;;  %892 = vst [vmem:[%s323_s20 + $0x10] sm:$0xff] %v888_v52 }
 0x252   : > { %1260 = shalt.err (!%p1257_p2)
}
 0x253   : > { %s1261_s16 = scalar_lea.hbm %s1612_s28, 512  ;;  %s1265_s20 = scalar_lea.hbm %s1663_s8, 2048 }
 0x254   : > { %p1262_p4 = scmp.ne.s32.totalorder %s1612_s28, %s1261_s16  ;;  %p1266_p13 = scmp.lt.u32.totalorder %s1612_s28, %s1663_s8 }
 0x255   : > { %p1267_p1 = scmp.lt.u32.totalorder %s1265_s20, %s1261_s16  ;;  %p1269_p6 = scmp.lt.u32.totalorder %s1261_s16, %s1612_s28 }
 0x256   : > { %p1263_p5 = pnand %p1262_p4, %p1671_p10 }
 0x257   : > { %p1268_p3 = por %p1267_p1, %p1266_p13 }
 0x258   : > { %p1264_p7 = pneg %p1263_p5 }
 0x259   : > { %p1270_p11 = por %p1269_p6, %p1268_p3 }
 0x25b   : > { %p1271_p12 = pnand %p1270_p11, %p1264_p7 }
 0x25d   : > { %1274 = shalt.err (!%p1271_p12)
}
 0x25e   : > { %s1321_s17 = smov 128   ;;  %s1322_s11 = smov 512  }
 0x25f   : > { %s1323_s26 = smov 8  }
 0x260   : > { %1158 = dma.vmem_to_hbm [thread:$0]  (%p1671_p10), %s1607_s24, 512, %s1612_s28, %s895_s5, %s1321_s17, %s1322_s11, %s1323_s26  }
 0x261 PF: > { %p1169_p8 = scmp.ge.s32.totalorder %s1313_s10, 2  ;;  %s922_s14 = sand.u32 1, %s1301_s29  }
 0x262   : > { %p1672_p9 = scmp.ne.s32.totalorder %s1668_s19, 0  ;;  %s923_s13 = scalar_lea.sflag [#allocation5], %s922_s14 }
 0x264   : > { %p1165_p0 = pnand %p1169_p8, %p1672_p9 }
 0x266   : > { %1296 = dma.done.wait (!%p1165_p0), %s923_s13, 512  }
 0x267   : > { %1298 = vsyncadd (!%p1165_p0), %s923_s13, 4294966784  ;;  %p22_p2 = scmp.ge.s32.totalorder %s1397_s12, 6   ;;  %s1673_s29 = smov %s1305_s30 }
 0x268   : > { %s1674_s30 = smov %s1309_s9  ;;  %s1675_s9 = smov %s1409_s15 }
 0x269   : > { %s1676_s10 = smov %s1397_s12  ;;  %24 = sbr.rel (!%p22_p2) target bundleno = 7 (0x7), region = 98 }
 0x270   :  { %928 = vsyncpa [#allocation4], 1 }
 0x271   :  { %930 = vsyncpa [#allocation4 + $0x1], 1 }
 0x272   :  { %931 = vsyncpa [#allocation5], 1 }
 0x273   :  { %933 = vsyncpa [#allocation5 + $0x1], 1 }

</bundles_post_ra>
